<compile_context>
chip_gen: v5e
topology: v5e:2x2
jax: 0.10.0
libtpu: 0.0.40
codegen_flags: <defaults>
</compile_context>

<pallas_src>
import jax
import jax.numpy as jnp
from jax.experimental import pallas as pl
from jax.experimental.pallas import tpu as pltpu


def _round_up(v, m):
    return ((v + m - 1) // m) * m


def _vmem_capacity_bytes():
    """Per-core VMEM capacity; conservative fallback = v7x's 64 MiB/TC."""
    try:
        return int(pltpu.get_tpu_info().vmem_capacity_bytes)
    except Exception:
        return 64 << 20


def _footprint(tm, tk, n_pad, f_in_pad, f_out_pad, x_resident):
    """Approximate VMEM bytes for one pipelined instance of this tiling."""
    adj = 2 * tm * tk * 2                                   # double-buffered bf16
    xb = (n_pad * f_in_pad * 2) if x_resident else (2 * tk * f_in_pad * 2)
    wt = f_in_pad * f_out_pad * 2                           # single-buffered bf16
    bb = 8 * f_out_pad * 4                                  # bias (sublane-padded)
    out = 2 * tm * f_out_pad * 4                            # double-buffered f32
    acc = tm * f_in_pad * 4                                 # f32 scratch
    return adj + xb + wt + bb + out + acc


def _choose_tiling(n, f_in_pad, f_out_pad, vmem_cap):
    """Pick (tm, tk, n_pad, x_resident) sized to the per-core VMEM budget."""
    budget = int(vmem_cap * 0.70)

    # Small graphs: one tile per axis, x trivially resident.
    if n <= 1024:
        n_pad = _round_up(n, 128)
        return n_pad, n_pad, n_pad, True

    n_pad = _round_up(n, 512)
    # Tiles must divide n_pad and stay 512-aligned (multiple of 128 for v5e
    # and 256 for v6e/v7x MXU, lane-dense stores).
    divisors = [d for d in range(512, n_pad + 1, 512) if n_pad % d == 0]
    tk_opts = [d for d in divisors if d <= 4096]
    # Keep >=2 row tiles so ("parallel", ...) can shard across both v7x cores.
    tm_opts = [d for d in divisors if d <= 2048 and n_pad // d >= 2] or [512]

    x_resident = (n_pad * f_in_pad * 2) <= budget // 3

    best = None
    for tm in tm_opts:
        for tk in tk_opts:
            if _footprint(tm, tk, n_pad, f_in_pad, f_out_pad, x_resident) > budget:
                continue
            key = (tm * tk, tk, tm)     # biggest tiles; tie-break deeper reduction
            if best is None or key > best[0]:
                best = (key, tm, tk)
    if best is None:
        return 512, 512, n_pad, False
    _, tm, tk = best
    return tm, tk, n_pad, x_resident


def _make_gcn_kernel(tk, x_resident):
    def kernel(adj_ref, x_ref, wt_ref, b_ref, out_ref, acc_ref):
        """One (row-tile i, reduction-tile k) grid step.

        adj_ref: (tm, tk)        bf16  normalized-adjacency tile
        x_ref:   (n_pad, Fi) or (tk, Fi)  bf16  node features (resident / tiled)
        wt_ref:  (Fi, Fo)        bf16  pre-transposed weight W^T
        b_ref:   (1,  Fo)        f32   bias
        out_ref: (tm, Fo)        f32   output tile (resident across k)
        acc_ref: (tm, Fi)        f32   VMEM accumulator for A_norm @ x
        """
        k = pl.program_id(1)

        @pl.when(k == 0)
        def _():
            acc_ref[...] = jnp.zeros_like(acc_ref)

        if x_resident:
            start = pl.multiple_of(k * tk, tk)
            x_blk = x_ref[pl.ds(start, tk), :]
        else:
            x_blk = x_ref[...]

        # Hot loop: bf16 MXU matmul with f32 accumulation.
        acc_ref[...] += jnp.dot(adj_ref[...], x_blk,
                                preferred_element_type=jnp.float32)

        # Epilogue (once per row tile): (A_norm @ x) @ W^T + b.
        @pl.when(k == pl.num_programs(1) - 1)
        def _():
            y = jnp.dot(acc_ref[...].astype(wt_ref.dtype), wt_ref[...],
                        preferred_element_type=jnp.float32)
            out_ref[...] = (y + b_ref[...]).astype(out_ref.dtype)

    return kernel


def gcn_conv(x, edge_index, weight, bias):
    """x: [N, Fin] f32, edge_index: [2, E] int32, weight: [Fout, Fin], bias: [Fout]."""
    n, f_in = x.shape
    f_out = weight.shape[0]
    row, col = edge_index[0], edge_index[1]

    # --- glue (JAX): degree / normalization coefficients ---------------------
    ones = jnp.ones_like(row, dtype=jnp.float32)
    deg = jnp.zeros((n,), dtype=jnp.float32).at[row].add(ones)
    dinv = jnp.power(deg, -0.5)
    dinv = jnp.where(jnp.isinf(dinv), 0.0, dinv)
    norm = dinv[row] * dinv[col]

    # --- layout plumbing ------------------------------------------------------
    f_in_pad = _round_up(f_in, 128)
    f_out_pad = _round_up(f_out, 128)
    vmem_cap = _vmem_capacity_bytes()
    tm, tk, n_pad, x_resident = _choose_tiling(n, f_in_pad, f_out_pad, vmem_cap)

    # One-pass padded adjacency: scatter norm straight into the padded f32
    # buffer (duplicate edges accumulate in f32), cast once to bf16.
    adj_p = (jnp.zeros((n_pad, n_pad), jnp.float32)
             .at[row, col].add(norm)
             .astype(jnp.bfloat16))
    x_p = jnp.pad(x.astype(jnp.bfloat16),
                  ((0, n_pad - n), (0, f_in_pad - f_in)))
    # Pre-transpose W once in the wrapper (lane-dense F_out, no in-kernel .T).
    wt_p = jnp.pad(weight.T.astype(jnp.bfloat16),
                   ((0, f_in_pad - f_in), (0, f_out_pad - f_out)))
    b_p = jnp.pad(bias.astype(jnp.float32), (0, f_out_pad - f_out))[None, :]

    grid = (n_pad // tm, n_pad // tk)

    if x_resident:
        # Whole feature matrix lives in VMEM for the entire call; sliced with
        # pl.ds inside the kernel (no re-streaming per row tile).
        x_spec = pl.BlockSpec((n_pad, f_in_pad), lambda i, k: (0, 0),
                              pipeline_mode=pl.Buffered(1))
    else:
        x_spec = pl.BlockSpec((tk, f_in_pad), lambda i, k: (k, 0))

    footprint = _footprint(tm, tk, n_pad, f_in_pad, f_out_pad, x_resident)
    vmem_limit = int(min(max(footprint * 1.25 + (2 << 20), 32 << 20),
                         vmem_cap * 0.85))

    out_p = pl.pallas_call(
        _make_gcn_kernel(tk, x_resident),
        out_shape=jax.ShapeDtypeStruct((n_pad, f_out_pad), jnp.float32),
        grid_spec=pltpu.PrefetchScalarGridSpec(
            num_scalar_prefetch=0,
            grid=grid,
            in_specs=[
                pl.BlockSpec((tm, tk), lambda i, k: (i, k)),      # adj stream
                x_spec,                                           # features
                pl.BlockSpec((f_in_pad, f_out_pad), lambda i, k: (0, 0),
                             pipeline_mode=pl.Buffered(1)),       # W^T (constant)
                pl.BlockSpec((1, f_out_pad), lambda i, k: (0, 0),
                             pipeline_mode=pl.Buffered(1)),       # bias (constant)
            ],
            out_specs=pl.BlockSpec((tm, f_out_pad), lambda i, k: (i, 0)),
            scratch_shapes=[pltpu.VMEM((tm, f_in_pad), jnp.float32)],
        ),
        compiler_params=pltpu.CompilerParams(
            dimension_semantics=("parallel", "arbitrary"),
            vmem_limit_bytes=vmem_limit,
        ),
    )(adj_p, x_p, wt_p, b_p)

    return out_p[:n, :f_out]


def gcn_conv_reference(x, edge_index, weight, bias):
    """Pure-JAX f32 reference mirroring the PyTorch forward semantics."""
    n = x.shape[0]
    row, col = edge_index[0], edge_index[1]
    deg = jnp.zeros((n,), dtype=x.dtype).at[row].add(
        jnp.ones_like(row, dtype=x.dtype))
    dinv = jnp.power(deg, -0.5)
    dinv = jnp.where(jnp.isinf(dinv), 0.0, dinv)
    norm = dinv[row] * dinv[col]
    out = jnp.zeros_like(x).at[row].add(norm[:, None] * x[col])
    return out @ weight.T + bias


if __name__ == "__main__":
    # Small shapes consistent with the module: N nodes, E edges, Fin -> Fout.
    N, E, F_IN, F_OUT = 16, 40, 8, 16

    key = jax.random.PRNGKey(0)
    kx, krow, kcol, kw, kb = jax.random.split(key, 5)

    x = jax.random.normal(kx, (N, F_IN), dtype=jnp.float32)
    row = jax.random.randint(krow, (E,), 0, N, dtype=jnp.int32)
    col = jax.random.randint(kcol, (E,), 0, N, dtype=jnp.int32)
    edge_index = jnp.stack([row, col], axis=0)  # [2, E]

    # Deterministic nn.Linear-style init: U(-1/sqrt(Fin), 1/sqrt(Fin)).
    bound = 1.0 / (F_IN ** 0.5)
    weight = jax.random.uniform(kw, (F_OUT, F_IN), jnp.float32, -bound, bound)
    bias = jax.random.uniform(kb, (F_OUT,), jnp.float32, -bound, bound)

    y = gcn_conv(x, edge_index, weight, bias)
    y = jax.block_until_ready(y)

    y_ref = gcn_conv_reference(x, edge_index, weight, bias)
    assert y.shape == (N, F_OUT)
    # bf16 adjacency / feature streams (f32 accumulation) -> ~1e-3..1e-2 abs error.
    assert jnp.allclose(y, y_ref, atol=5e-2, rtol=5e-2), "mismatch vs reference"

    print("KERNEL_OK")
</pallas_src>

<mosaic_0001>
module attributes {stable_mosaic.version = 11 : i64} {
  func.func @kernel(%arg0: i32, %arg1: i32, %arg2: memref<128x128xbf16, #tpu.memory_space<vmem>>, %arg3: memref<128x128xbf16, #tpu.memory_space<vmem>>, %arg4: memref<128x128xbf16, #tpu.memory_space<vmem>>, %arg5: memref<1x128xf32, #tpu.memory_space<vmem>>, %arg6: memref<128x128xf32, #tpu.memory_space<vmem>>, %arg7: memref<128x128xf32, #tpu.memory_space<vmem>>) attributes {dimension_semantics = [#tpu.dimension_semantics<parallel>, #tpu.dimension_semantics<arbitrary>], iteration_bounds = array<i64: 1, 1>, scalar_prefetch = 0 : i64, scratch_operands = 1 : i64, tpu.core_type = #tpu.core_type<tc>, window_params = [{transform_indices = @transform_0, window_bounds = array<i64: 128, 128>}, {pipeline_mode = #tpu.pipeline_mode<synchronous>, transform_indices = @transform_1, window_bounds = array<i64: 128, 128>}, {pipeline_mode = #tpu.pipeline_mode<synchronous>, transform_indices = @transform_2, window_bounds = array<i64: 128, 128>}, {pipeline_mode = #tpu.pipeline_mode<synchronous>, transform_indices = @transform_3, window_bounds = array<i64: 1, 128>}, {transform_indices = @transform_4, window_bounds = array<i64: 128, 128>}]} {
    %c0_i32 = arith.constant 0 : i32
    %0 = arith.cmpi eq, %arg1, %c0_i32 : i32
    %1 = arith.extui %0 : i1 to i32
    %c0_i32_0 = arith.constant 0 : i32
    %2 = arith.cmpi ne, %1, %c0_i32_0 : i32
    scf.if %2 {
      %cst_9 = arith.constant 0.000000e+00 : f32
      %15 = vector.broadcast %cst_9 : f32 to vector<128x128xf32>
      %c0_10 = arith.constant 0 : index
      %c0_11 = arith.constant 0 : index
      %16 = vector.load %arg7[%c0_10, %c0_11] : memref<128x128xf32, #tpu.memory_space<vmem>>, vector<128x128xf32>
      tpu.vector_store %arg7[%c0_10, %c0_11], %15 {strides = array<i32>} : memref<128x128xf32, #tpu.memory_space<vmem>>, vector<128x128xf32>,
    } else {
    }
    %c128_i32 = arith.constant 128 : i32
    %3 = arith.muli %arg1, %c128_i32 : i32
    %4 = tpu.assume_multiple %3, 128 : i32
    %5 = arith.index_cast %4 : i32 to index
    %c0 = arith.constant 0 : index
    %6 = vector.load %arg3[%5, %c0] : memref<128x128xbf16, #tpu.memory_space<vmem>>, vector<128x128xbf16>
    %c0_1 = arith.constant 0 : index
    %c0_2 = arith.constant 0 : index
    %7 = vector.load %arg7[%c0_1, %c0_2] : memref<128x128xf32, #tpu.memory_space<vmem>>, vector<128x128xf32>
    %c0_3 = arith.constant 0 : index
    %c0_4 = arith.constant 0 : index
    %8 = vector.load %arg2[%c0_3, %c0_4] : memref<128x128xbf16, #tpu.memory_space<vmem>>, vector<128x128xbf16>
    %cst = arith.constant dense<0.000000e+00> : vector<128x128xf32>
    %9 = tpu.matmul %8, %6, %cst {dimension_numbers = #tpu.dot_dimension_numbers<[1], [0], [0], [1], [0, 0, 1, 1], [], []>} : vector<128x128xbf16>, vector<128x128xbf16>, vector<128x128xf32> -> vector<128x128xf32>
    %10 = arith.addf %7, %9 : vector<128x128xf32>
    %c0_5 = arith.constant 0 : index
    %c0_6 = arith.constant 0 : index
    %11 = vector.load %arg7[%c0_5, %c0_6] : memref<128x128xf32, #tpu.memory_space<vmem>>, vector<128x128xf32>
    tpu.vector_store %arg7[%c0_5, %c0_6], %10 {strides = array<i32>} : memref<128x128xf32, #tpu.memory_space<vmem>>, vector<128x128xf32>,
    %c0_i32_7 = arith.constant 0 : i32
    %12 = arith.cmpi eq, %arg1, %c0_i32_7 : i32
    %13 = arith.extui %12 : i1 to i32
    %c0_i32_8 = arith.constant 0 : i32
    %14 = arith.cmpi ne, %13, %c0_i32_8 : i32
    scf.if %14 {
      %c0_9 = arith.constant 0 : index
      %c0_10 = arith.constant 0 : index
      %15 = vector.load %arg7[%c0_9, %c0_10] : memref<128x128xf32, #tpu.memory_space<vmem>>, vector<128x128xf32>
      %16 = arith.truncf %15 : vector<128x128xf32> to vector<128x128xbf16>
      %c0_11 = arith.constant 0 : index
      %c0_12 = arith.constant 0 : index
      %17 = vector.load %arg4[%c0_11, %c0_12] : memref<128x128xbf16, #tpu.memory_space<vmem>>, vector<128x128xbf16>
      %cst_13 = arith.constant dense<0.000000e+00> : vector<128x128xf32>
      %18 = tpu.matmul %16, %17, %cst_13 {dimension_numbers = #tpu.dot_dimension_numbers<[1], [0], [0], [1], [0, 0, 1, 1], [], []>} : vector<128x128xbf16>, vector<128x128xbf16>, vector<128x128xf32> -> vector<128x128xf32>
      %c0_14 = arith.constant 0 : index
      %c0_15 = arith.constant 0 : index
      %19 = vector.load %arg5[%c0_14, %c0_15] : memref<1x128xf32, #tpu.memory_space<vmem>>, vector<1x128xf32>
      %20 = vector.broadcast %19 : vector<1x128xf32> to vector<128x128xf32>
      %21 = arith.addf %18, %20 : vector<128x128xf32>
      %c0_16 = arith.constant 0 : index
      %c0_17 = arith.constant 0 : index
      %22 = vector.load %arg6[%c0_16, %c0_17] : memref<128x128xf32, #tpu.memory_space<vmem>>, vector<128x128xf32>
      tpu.vector_store %arg6[%c0_16, %c0_17], %21 {strides = array<i32>} : memref<128x128xf32, #tpu.memory_space<vmem>>, vector<128x128xf32>,
    } else {
    }
    return
  }
  func.func @transform_0(%arg0: i32, %arg1: i32) -> (i32, i32) {
    %c0_i32 = arith.constant 0 : i32
    return %arg0, %arg1 : i32, i32
  }
  func.func @transform_1(%arg0: i32, %arg1: i32) -> (i32, i32) {
    %c0_i32 = arith.constant 0 : i32
    %c0_i32_0 = arith.constant 0 : i32
    %c0_i32_1 = arith.constant 0 : i32
    return %c0_i32, %c0_i32_0 : i32, i32
  }
  func.func @transform_2(%arg0: i32, %arg1: i32) -> (i32, i32) {
    %c0_i32 = arith.constant 0 : i32
    %c0_i32_0 = arith.constant 0 : i32
    %c0_i32_1 = arith.constant 0 : i32
    return %c0_i32, %c0_i32_0 : i32, i32
  }
  func.func @transform_3(%arg0: i32, %arg1: i32) -> (i32, i32) {
    %c0_i32 = arith.constant 0 : i32
    %c0_i32_0 = arith.constant 0 : i32
    %c0_i32_1 = arith.constant 0 : i32
    return %c0_i32, %c0_i32_0 : i32, i32
  }
  func.func @transform_4(%arg0: i32, %arg1: i32) -> (i32, i32) {
    %c0_i32 = arith.constant 0 : i32
    %c0_i32_0 = arith.constant 0 : i32
    return %arg0, %c0_i32 : i32, i32
  }
}

</mosaic_0001>

<bundles_post_ra>
// kernel: tpu_custom_call.1
= control target key start
LH: loop header
LB: loop body
LE: loop exit
PB: predicated region body
PF: predicated region fallthrough
CT: control target
= control target key end

     0   :  { %9 = vsyncpa [#allocation4], 0  ;;  %s792_s0 = inlined_call_operand.hbm [shape: bf16[128,128], index: 0, kind: input, shape index: {}]   ;;  %s793_s1 = inlined_call_operand.hbm [shape: bf16[128,128], index: 1, kind: input, shape index: {}]   ;;  %s794_s2 = inlined_call_operand.hbm [shape: bf16[128,128], index: 2, kind: input, shape index: {}]   ;;  %s795_s3 = inlined_call_operand.vmem [shape: f32[1,128], index: 3, kind: input, shape index: {}]   ;;  %s796_s4 = inlined_call_operand.hbm [shape: f32[128,128], index: 4, kind: output, shape index: {}]  }
   0x1   :  { %10 = vsyncpa [#allocation7], 0 }
   0x2   :  { %11 = vsyncpa [#allocation5], 0  ;;  %s29_s17 = sshll.u32 %s793_s1, 4  ;;  %s744_s18 = smov [#allocation6]   ;;  %s30_s17 = int_to_ptr.hbm [resolvable:$true] %s29_s17 }
   0x3   :  { %s31_s19 = sshll.u32 %s744_s18, 4  ;;  %s16_s22 = sshll.u32 %s792_s0, 4  ;;  %s32_s19 = int_to_ptr.vmem [resolvable:$true] %s31_s19  ;;  %s17_s22 = int_to_ptr.hbm [resolvable:$true] %s16_s22 }
   0x4   :  { %s745_s23 = smov 64   ;;  %s746_s24 = smov 4  }
   0x5   :  { %37 = dma.hbm_to_vmem [thread:$0]  %s30_s17, 1024, %s32_s19, [#allocation7], %s745_s23, %s745_s23, %s746_s24  }
   0x6   :  { %s747_s25 = smov [#allocation3]   ;;  %s42_s29 = sshll.u32 %s794_s2, 4  ;;  %s43_s29 = int_to_ptr.hbm [resolvable:$true] %s42_s29 }
   0x7   :  { %s18_s26 = sshll.u32 %s747_s25, 4  ;;  %s748_s1 = smov [#allocation8]   ;;  %s19_s26 = int_to_ptr.vmem [resolvable:$true] %s18_s26 }
   0x8   :  { %24 = dma.hbm_to_vmem [thread:$0]  %s17_s22, 1024, %s19_s26, [#allocation4], %s745_s23, %s745_s23, %s746_s24  }
   0x9   :  { %s44_s30 = sshll.u32 %s748_s1, 4  ;;  %s45_s30 = int_to_ptr.vmem [resolvable:$true] %s44_s30 }
   0xa   :  { %50 = dma.hbm_to_vmem [thread:$0]  %s43_s29, 1024, %s45_s30, [#allocation7], %s745_s23, %s745_s23, %s746_s24  }
   0xb   :  { %738 = dma.done.wait [#allocation4], 1024  }
   0xc   :  { %739 = vsyncadd [#allocation4], 4294966272 }
   0xd   :  { %740 = dma.done.wait [#allocation7], 2048  }
   0xe   :  { %741 = vsyncadd [#allocation7], 4294965248  ;;  %v600_v0 = vld [vmem:[#allocation6 + $0x38] sm:$0xff]  ;;  %v599_v1 = vld [vmem:[#allocation6 + $0x30] sm:$0xff]  ;;  %s481_s8 = sshll.u32 %s796_s4, 4  ;;  %s750_s9 = smov 128   ;;  %s482_s8 = int_to_ptr.hbm [resolvable:$true] %s481_s8 }
   0xf   :  { %234 = vmatpush.bf16.msra.mxu0 %v600_v0  ;;  %617 = vmatpush.bf16.msra.mxu2 %v600_v0  ;;  %v598_v2 = vld [vmem:[#allocation6 + $0x28] sm:$0xff]  ;;  %v597_v3 = vld [vmem:[#allocation6 + $0x20] sm:$0xff]  ;;  %v596_v4 = vld [vmem:[#allocation6 + $0x18] sm:$0xff]  ;;  %s751_s10 = smov 8  }
  0x10   :  { %v595_v5 = vld [vmem:[#allocation6 + $0x10] sm:$0xff]  ;;  %v594_v6 = vld [vmem:[#allocation6 + $0x8] sm:$0xff]  ;;  %v593_v7 = vld [vmem:[#allocation6] sm:$0xff] }
  0x11   :  { %v601_v8 = vld [vmem:[#allocation3] sm:$0xff]  ;;  %v602_v10 = vld [vmem:[#allocation3 + $0x8] sm:$0xff]  ;;  %v616_v12 = vld [vmem:[#allocation8 + $0x38] sm:$0xff] }
  0x12   :  { %v605_v9 = vld [vmem:[#allocation3 + $0x20] sm:$0xff]  ;;  %v606_v11 = vld [vmem:[#allocation3 + $0x28] sm:$0xff]  ;;  %410 = vmatpush.bf16.msra.mxu1 %v616_v12  ;;  %v615_v13 = vld [vmem:[#allocation8 + $0x30] sm:$0xff]  ;;  %625 = vmatpush.bf16.msra.mxu3 %v616_v12 }
  0x13   :  { %235 = vmatpush.bf16.msra.mxu0 %v599_v1  ;;  %618 = vmatpush.bf16.msra.mxu2 %v599_v1  ;;  %v614_v14 = vld [vmem:[#allocation8 + $0x28] sm:$0xff]  ;;  %v613_v15 = vld [vmem:[#allocation8 + $0x20] sm:$0xff]  ;;  %v603_v16 = vld [vmem:[#allocation3 + $0x10] sm:$0xff] }
  0x14   :  { %v607_v17 = vld [vmem:[#allocation3 + $0x30] sm:$0xff]  ;;  %v612_v18 = vld [vmem:[#allocation8 + $0x18] sm:$0xff]  ;;  %v610_v22 = vld [vmem:[#allocation8 + $0x8] sm:$0xff] }
  0x15   :  { %v604_v19 = vld [vmem:[#allocation3 + $0x18] sm:$0xff]  ;;  %v611_v21 = vld [vmem:[#allocation8 + $0x10] sm:$0xff]  ;;  %v609_v23 = vld [vmem:[#allocation8] sm:$0xff] }
  0x16   :  { %411 = vmatpush.bf16.msra.mxu1 %v615_v13  ;;  %626 = vmatpush.bf16.msra.mxu3 %v615_v13  ;;  %v608_v20 = vld [vmem:[#allocation3 + $0x38] sm:$0xff]  ;;  %v641_v48 = vld [vmem:[%s795_s3] ss:$0 sm:$0xff]  ;;  %s749_s3 = smov [#allocation9]  }
  0x17   :  { %236 = vmatpush.bf16.msra.mxu0 %v598_v2  ;;  %619 = vmatpush.bf16.msra.mxu2 %v598_v2  ;;  %s479_s5 = sshll.u32 %s749_s3, 4  ;;  %s480_s5 = int_to_ptr.vmem [resolvable:$true] %s479_s5 }
  0x1a   :  { %412 = vmatpush.bf16.msra.mxu1 %v614_v14  ;;  %627 = vmatpush.bf16.msra.mxu3 %v614_v14 }
  0x1b   :  { %237 = vmatpush.bf16.msra.mxu0 %v597_v3  ;;  %620 = vmatpush.bf16.msra.mxu2 %v597_v3 }
  0x1e   :  { %413 = vmatpush.bf16.msra.mxu1 %v613_v15  ;;  %628 = vmatpush.bf16.msra.mxu3 %v613_v15 }
  0x1f   :  { %238 = vmatpush.bf16.msra.mxu0 %v596_v4  ;;  %621 = vmatpush.bf16.msra.mxu2 %v596_v4 }
  0x22   :  { %414 = vmatpush.bf16.msra.mxu1 %v612_v18  ;;  %629 = vmatpush.bf16.msra.mxu3 %v612_v18 }
  0x23   :  { %239 = vmatpush.bf16.msra.mxu0 %v595_v5  ;;  %622 = vmatpush.bf16.msra.mxu2 %v595_v5 }
  0x26   :  { %415 = vmatpush.bf16.msra.mxu1 %v611_v21  ;;  %630 = vmatpush.bf16.msra.mxu3 %v611_v21 }
  0x27   :  { %240 = vmatpush.bf16.msra.mxu0 %v594_v6  ;;  %623 = vmatpush.bf16.msra.mxu2 %v594_v6 }
  0x2a   :  { %416 = vmatpush.bf16.msra.mxu1 %v610_v22  ;;  %631 = vmatpush.bf16.msra.mxu3 %v610_v22 }
  0x2b   :  { %241 = vmatpush.bf16.msra.mxu0 %v593_v7  ;;  %624 = vmatpush.bf16.msra.mxu2 %v593_v7 }
  0x2e   :  { %242 = vmatmul.bf16.vlgmr.msra.gmra.mxu0 %v601_v8  ;;  %262 = vmatmul.bf16.vlgmr.msra.gmra.mxu2 %v605_v9 }
  0x2f   :  { %417 = vmatpush.bf16.msra.mxu1 %v609_v23  ;;  %632 = vmatpush.bf16.msra.mxu3 %v609_v23 }
  0x3e   :  { %247 = vmatmul.bf16.gmra.mxu0 %v602_v10  ;;  %267 = vmatmul.bf16.gmra.mxu2 %v606_v11 }
  0x4e   :  { %252 = vmatmul.bf16.gmra.mxu0 %v603_v16  ;;  %272 = vmatmul.bf16.gmra.mxu2 %v607_v17 }
  0x5e   :  { %257 = vmatmul.bf16.gmra.mxu0 %v604_v19  ;;  %277 = vmatmul.bf16.gmra.mxu2 %v608_v20 }
  0xab   :  { %v243_v24 = vpop.f32.mrf.mxu0 }
  0xb1   :  { %v263_v25 = vpop.f32.mrf.mxu2 }
  0xb3   :  { %v245_v26 = vpop.f32.mrf.mxu0 }
  0xb4   :  { %v334_v27 = vpack.c.bf16 %v245_v26, %v243_v24 }
  0xb6   :  { %418 = vmatmul.bf16.vlgmr.msra.gmra.mxu1 %v334_v27 }
  0xb9   :  { %v265_v28 = vpop.f32.mrf.mxu2 }
  0xba   :  { %v338_v29 = vpack.c.bf16 %v265_v28, %v263_v25 }
  0xbb   :  { %v248_v30 = vpop.f32.mrf.mxu0 }
  0xbc   :  { %438 = vmatmul.bf16.vlgmr.msra.gmra.mxu3 %v338_v29 }
  0xc1   :  { %v268_v31 = vpop.f32.mrf.mxu2 }
  0xc3   :  { %v250_v32 = vpop.f32.mrf.mxu0 }
  0xc4   :  { %v335_v33 = vpack.c.bf16 %v250_v32, %v248_v30 }
  0xc6   :  { %423 = vmatmul.bf16.gmra.mxu1 %v335_v33 }
  0xc9   :  { %v270_v34 = vpop.f32.mrf.mxu2 }
  0xca   :  { %v339_v35 = vpack.c.bf16 %v270_v34, %v268_v31 }
  0xcb   :  { %v253_v36 = vpop.f32.mrf.mxu0 }
  0xcc   :  { %443 = vmatmul.bf16.gmra.mxu3 %v339_v35 }
  0xd1   :  { %v273_v37 = vpop.f32.mrf.mxu2 }
  0xd3   :  { %v255_v38 = vpop.f32.mrf.mxu0 }
  0xd4   :  { %v336_v39 = vpack.c.bf16 %v255_v38, %v253_v36 }
  0xd6   :  { %428 = vmatmul.bf16.gmra.mxu1 %v336_v39 }
  0xd9   :  { %v275_v40 = vpop.f32.mrf.mxu2 }
  0xda   :  { %v340_v41 = vpack.c.bf16 %v275_v40, %v273_v37 }
  0xdb   :  { %v258_v42 = vpop.f32.mrf.mxu0 }
  0xdc   :  { %448 = vmatmul.bf16.gmra.mxu3 %v340_v41 }
  0xe1   :  { %v278_v43 = vpop.f32.mrf.mxu2 }
  0xe3   :  { %v260_v44 = vpop.f32.mrf.mxu0 }
  0xe4   :  { %v337_v45 = vpack.c.bf16 %v260_v44, %v258_v42 }
  0xe6   :  { %433 = vmatmul.bf16.gmra.mxu1 %v337_v45 }
  0xe9   :  { %v280_v46 = vpop.f32.mrf.mxu2 }
  0xea   :  { %v341_v47 = vpack.c.bf16 %v280_v46, %v278_v43 }
  0xec   :  { %453 = vmatmul.bf16.gmra.mxu3 %v341_v47 }
 0x133   :  { %v419_v49 = vpop.f32.mrf.mxu1 }
 0x134   :  { %v420_v50 = vadd.f32 %v641_v48, %v419_v49 }
 0x136   :  { %459 = vst [vmem:[#allocation9] sm:$0xff] %v420_v50 }
 0x13b   :  { %v421_v51 = vpop.f32.mrf.mxu1 }
 0x13c   :  { %v422_v52 = vadd.f32 %v641_v48, %v421_v51 }
 0x13e   :  { %460 = vst [vmem:[#allocation9 + $0x8] sm:$0xff] %v422_v52 }
 0x13f   :  { %v439_v53 = vpop.f32.mrf.mxu3 }
 0x140   :  { %v440_v54 = vadd.f32 %v641_v48, %v439_v53 }
 0x142   :  { %467 = vst [vmem:[#allocation9 + $0x40] sm:$0xff] %v440_v54 }
 0x143   :  { %v424_v55 = vpop.f32.mrf.mxu1 }
 0x144   :  { %v425_v56 = vadd.f32 %v641_v48, %v424_v55 }
 0x146   :  { %461 = vst [vmem:[#allocation9 + $0x10] sm:$0xff] %v425_v56 }
 0x147   :  { %v441_v57 = vpop.f32.mrf.mxu3 }
 0x148   :  { %v442_v58 = vadd.f32 %v641_v48, %v441_v57 }
 0x14a   :  { %468 = vst [vmem:[#allocation9 + $0x48] sm:$0xff] %v442_v58 }
 0x14b   :  { %v426_v59 = vpop.f32.mrf.mxu1 }
 0x14c   :  { %v427_v60 = vadd.f32 %v641_v48, %v426_v59 }
 0x14e   :  { %462 = vst [vmem:[#allocation9 + $0x18] sm:$0xff] %v427_v60 }
 0x14f   :  { %v444_v61 = vpop.f32.mrf.mxu3 }
 0x150   :  { %v445_v62 = vadd.f32 %v641_v48, %v444_v61 }
 0x152   :  { %469 = vst [vmem:[#allocation9 + $0x50] sm:$0xff] %v445_v62 }
 0x153   :  { %v429_v63 = vpop.f32.mrf.mxu1 }
 0x154   :  { %v430_v0 = vadd.f32 %v641_v48, %v429_v63 }
 0x156   :  { %463 = vst [vmem:[#allocation9 + $0x20] sm:$0xff] %v430_v0 }
 0x157   :  { %v446_v1 = vpop.f32.mrf.mxu3 }
 0x158   :  { %v447_v2 = vadd.f32 %v641_v48, %v446_v1 }
 0x15a   :  { %470 = vst [vmem:[#allocation9 + $0x58] sm:$0xff] %v447_v2 }
 0x15b   :  { %v431_v3 = vpop.f32.mrf.mxu1 }
 0x15c   :  { %v432_v4 = vadd.f32 %v641_v48, %v431_v3 }
 0x15e   :  { %464 = vst [vmem:[#allocation9 + $0x28] sm:$0xff] %v432_v4 }
 0x15f   :  { %v449_v5 = vpop.f32.mrf.mxu3 }
 0x160   :  { %v450_v6 = vadd.f32 %v641_v48, %v449_v5 }
 0x162   :  { %471 = vst [vmem:[#allocation9 + $0x60] sm:$0xff] %v450_v6 }
 0x163   :  { %v434_v7 = vpop.f32.mrf.mxu1 }
 0x164   :  { %v435_v8 = vadd.f32 %v641_v48, %v434_v7 }
 0x166   :  { %465 = vst [vmem:[#allocation9 + $0x30] sm:$0xff] %v435_v8 }
 0x167   :  { %v451_v9 = vpop.f32.mrf.mxu3 }
 0x168   :  { %v452_v10 = vadd.f32 %v641_v48, %v451_v9 }
 0x16a   :  { %472 = vst [vmem:[#allocation9 + $0x68] sm:$0xff] %v452_v10 }
 0x16b   :  { %v436_v11 = vpop.f32.mrf.mxu1 }
 0x16c   :  { %v437_v12 = vadd.f32 %v641_v48, %v436_v11 }
 0x16e   :  { %466 = vst [vmem:[#allocation9 + $0x38] sm:$0xff] %v437_v12 }
 0x16f   :  { %v454_v13 = vpop.f32.mrf.mxu3 }
 0x170   :  { %v455_v14 = vadd.f32 %v641_v48, %v454_v13 }
 0x172   :  { %473 = vst [vmem:[#allocation9 + $0x70] sm:$0xff] %v455_v14 }
 0x177   :  { %v456_v15 = vpop.f32.mrf.mxu3 }
 0x178   :  { %v457_v16 = vadd.f32 %v641_v48, %v456_v15 }
 0x17a   :  { %474 = vst [vmem:[#allocation9 + $0x78] sm:$0xff] %v457_v16 }
 0x17b   :  { %487 = dma.vmem_to_hbm [thread:$0]  %s480_s5, 2048, %s482_s8, [#allocation5], %s750_s9, %s750_s9, %s751_s10  }
 0x17c   :  { %742 = dma.done.wait [#allocation5], 2048  }
 0x17d   :  { %743 = vsyncadd [#allocation5], 4294965248 }
 0x17e   :  { %492 = vsyncpa [#allocation4], 1 }
 0x17f   :  { %493 = vsyncpa [#allocation7], 1 }
 0x180   :  { %494 = vsyncpa [#allocation5], 1 }

</bundles_post_ra>
